<compile_context>
chip_gen: v6e
topology: v6e:2x2x1
jax: 0.10.0
libtpu: 0.0.40
codegen_flags: <defaults>
</compile_context>

<pallas_src>
import jax
import jax.numpy as jnp
from jax import lax
from jax.experimental import pallas as pl
from jax.experimental.pallas import tpu as pltpu

MODEL_DIM = 512
HIDDEN = 128
LABELS = 2


def _round_up(n, m):
    return ((n + m - 1) // m) * m


def _cdiv(a, b):
    return -(-a // b)


def _bayes_probe_kernel(x_ref, w1_ref, b1_ref, w2_ref, b2_ref, o_ref):
    # In-VMEM cast of the activations (x arrives in its native dtype).
    x_bf = x_ref[...].astype(jnp.bfloat16)                       # (tm, 512)

    # fc1: (tm, 512) bf16 @ (512, 128) bf16 -> (tm, 128), f32 accumulate.
    h = jnp.dot(x_bf, w1_ref[...], preferred_element_type=jnp.float32)
    h = jnp.maximum(h + b1_ref[...], 0.0)                        # bias + relu, f32

    # fc2, transposed: (2, 128) bf16 contracted with (tm, 128) bf16 over the
    # 128-dim -> (2, tm) f32.  Output block stays lane-dense (last dim = tm).
    z_t = lax.dot_general(
        w2_ref[...], h.astype(jnp.bfloat16),
        dimension_numbers=(((1,), (1,)), ((), ())),
        preferred_element_type=jnp.float32)
    z_t = z_t + b2_ref[...]                                      # (2, 1) broadcast

    # Exact sigmoid in f32: exp on the EUP, the divide is cheap and exact.
    y = 1.0 / (1.0 + jnp.exp(-z_t))
    o_ref[...] = y.astype(o_ref.dtype)


def bayes_probe_forward(x, w1t, b1, w2t, b2, *, target_tm=2048):
    """x: (..., 512) -> (N, 2) with N = prod(leading dims)."""
    x2 = x.reshape(-1, MODEL_DIM)                                # native dtype, no copy cast
    n = x2.shape[0]

    # Row-tile selection:
    #   * small N -> a single block whose dims equal the array dims (no padding,
    #     no (8,128) divisibility requirement),
    #   * large N -> multiple-of-256 tile, capped so the grid has >= ~4 steps
    #     (lets dimension_semantics=("parallel",) shard rows across TensorCores).
    if n <= target_tm:
        tm = n
    else:
        tm = max(256, min(target_tm, _round_up(_cdiv(n, 4), 256)))
    n_steps = _cdiv(n, tm)

    # Tiny parameter tensors: casting them in the wrapper is negligible traffic.
    w1_bf = w1t.astype(jnp.bfloat16)                             # (512, 128)
    w2_bf = jnp.transpose(w2t).astype(jnp.bfloat16)              # (2, 128)
    b1_2d = b1.reshape(1, HIDDEN).astype(jnp.float32)            # (1, 128)
    b2_2d = b2.reshape(LABELS, 1).astype(jnp.float32)            # (2, 1)

    x_spec_kwargs = {}
    if n_steps >= 3:
        # Deeper buffering on the only bandwidth-heavy operand.
        x_spec_kwargs["pipeline_mode"] = pl.Buffered(3)
    x_spec = pl.BlockSpec((tm, MODEL_DIM), lambda i: (i, 0), **x_spec_kwargs)

    flops = 2 * n * (MODEL_DIM * HIDDEN + HIDDEN * LABELS)
    bytes_accessed = (
        n * MODEL_DIM * x2.dtype.itemsize                        # x in native dtype
        + MODEL_DIM * HIDDEN * 2 + HIDDEN * 4                    # fc1 weights/bias
        + LABELS * HIDDEN * 2 + LABELS * 4                       # fc2 weights/bias
        + n * LABELS * 4)                                        # output (f32)

    y_t = pl.pallas_call(
        _bayes_probe_kernel,
        out_shape=jax.ShapeDtypeStruct((LABELS, n), jnp.float32),
        grid_spec=pl.GridSpec(
            grid=(n_steps,),
            in_specs=[
                x_spec,                                                # x rows
                pl.BlockSpec((MODEL_DIM, HIDDEN), lambda i: (0, 0)),   # W1^T (full)
                pl.BlockSpec((1, HIDDEN), lambda i: (0, 0)),           # b1
                pl.BlockSpec((LABELS, HIDDEN), lambda i: (0, 0)),      # W2 (2, 128)
                pl.BlockSpec((LABELS, 1), lambda i: (0, 0)),           # b2
            ],
            out_specs=pl.BlockSpec((LABELS, tm), lambda i: (0, i)),
        ),
        compiler_params=pltpu.CompilerParams(
            dimension_semantics=("parallel",),
            vmem_limit_bytes=32 * 1024 * 1024),
        cost_estimate=pl.CostEstimate(
            flops=flops,
            transcendentals=n * LABELS,
            bytes_accessed=bytes_accessed),
    )(x2, w1_bf, b1_2d, w2_bf, b2_2d)

    return jnp.transpose(y_t)                                    # (N, 2)


def reference_forward(x, w1t, b1, w2t, b2):
    x2 = x.reshape(-1, MODEL_DIM).astype(jnp.float32)
    h = jnp.maximum(x2 @ w1t + b1[None, :], 0.0)
    z = h @ w2t + b2[None, :]
    return jax.nn.sigmoid(z)


if __name__ == "__main__":
    key = jax.random.PRNGKey(0)
    k_x, k_w1, k_b1, k_w2, k_b2 = jax.random.split(key, 5)

    # Small, shape-consistent input: batch=2, seq=8, model_dim=512 -> N=16 rows.
    x = jax.random.normal(k_x, (2, 8, MODEL_DIM), dtype=jnp.float32)

    # Deterministic "posterior mean" parameters of the two LinearGroupNJ layers,
    # stored transposed (in_features, out_features).
    w1t = 0.05 * jax.random.normal(k_w1, (MODEL_DIM, HIDDEN), dtype=jnp.float32)
    b1 = 0.01 * jax.random.normal(k_b1, (HIDDEN,), dtype=jnp.float32)
    w2t = 0.05 * jax.random.normal(k_w2, (HIDDEN, LABELS), dtype=jnp.float32)
    b2 = 0.01 * jax.random.normal(k_b2, (LABELS,), dtype=jnp.float32)

    out = jax.block_until_ready(bayes_probe_forward(x, w1t, b1, w2t, b2))
    ref = reference_forward(x, w1t, b1, w2t, b2)

    assert out.shape == (16, LABELS)
    # bf16 matmul operands vs the full-f32 reference (sigmoid compresses errors).
    assert jnp.allclose(out, ref, atol=2e-2, rtol=2e-2), "mismatch vs reference"

    print("KERNEL_OK")
</pallas_src>

<mosaic_0001>
module attributes {stable_mosaic.version = 11 : i64} {
  func.func @_bayes_probe_kernel(%arg0: i32, %arg1: memref<16x512xf32, #tpu.memory_space<vmem>>, %arg2: memref<512x128xbf16, #tpu.memory_space<vmem>>, %arg3: memref<1x128xf32, #tpu.memory_space<vmem>>, %arg4: memref<2x128xbf16, #tpu.memory_space<vmem>>, %arg5: memref<2x1xf32, #tpu.memory_space<vmem>>, %arg6: memref<2x16xf32, #tpu.memory_space<vmem>>) attributes {dimension_semantics = [#tpu.dimension_semantics<parallel>], iteration_bounds = array<i64: 1>, scalar_prefetch = 0 : i64, scratch_operands = 0 : i64, tpu.core_type = #tpu.core_type<tc>, window_params = [{transform_indices = @transform_0, window_bounds = array<i64: 16, 512>}, {pipeline_mode = #tpu.pipeline_mode<synchronous>, transform_indices = @transform_1, window_bounds = array<i64: 512, 128>}, {pipeline_mode = #tpu.pipeline_mode<synchronous>, transform_indices = @transform_2, window_bounds = array<i64: 1, 128>}, {pipeline_mode = #tpu.pipeline_mode<synchronous>, transform_indices = @transform_3, window_bounds = array<i64: 2, 128>}, {pipeline_mode = #tpu.pipeline_mode<synchronous>, transform_indices = @transform_4, window_bounds = array<i64: 2, 1>}, {transform_indices = @transform_5, window_bounds = array<i64: 2, 16>}]} {
    %c0 = arith.constant 0 : index
    %c0_0 = arith.constant 0 : index
    %0 = vector.load %arg1[%c0, %c0_0] : memref<16x512xf32, #tpu.memory_space<vmem>>, vector<16x512xf32>
    %1 = arith.truncf %0 : vector<16x512xf32> to vector<16x512xbf16>
    %c0_1 = arith.constant 0 : index
    %c0_2 = arith.constant 0 : index
    %2 = vector.load %arg2[%c0_1, %c0_2] : memref<512x128xbf16, #tpu.memory_space<vmem>>, vector<512x128xbf16>
    %cst = arith.constant dense<0.000000e+00> : vector<16x128xf32>
    %3 = tpu.matmul %1, %2, %cst {dimension_numbers = #tpu.dot_dimension_numbers<[1], [0], [0], [1], [0, 0, 1, 1], [], []>} : vector<16x512xbf16>, vector<512x128xbf16>, vector<16x128xf32> -> vector<16x128xf32>
    %c0_3 = arith.constant 0 : index
    %c0_4 = arith.constant 0 : index
    %4 = vector.load %arg3[%c0_3, %c0_4] : memref<1x128xf32, #tpu.memory_space<vmem>>, vector<1x128xf32>
    %5 = vector.broadcast %4 : vector<1x128xf32> to vector<16x128xf32>
    %6 = arith.addf %3, %5 : vector<16x128xf32>
    %cst_5 = arith.constant 0.000000e+00 : f32
    %7 = vector.broadcast %cst_5 : f32 to vector<16x128xf32>
    %8 = arith.maximumf %6, %7 : vector<16x128xf32>
    %c0_6 = arith.constant 0 : index
    %c0_7 = arith.constant 0 : index
    %9 = vector.load %arg4[%c0_6, %c0_7] : memref<2x128xbf16, #tpu.memory_space<vmem>>, vector<2x128xbf16>
    %10 = arith.truncf %8 : vector<16x128xf32> to vector<16x128xbf16>
    %cst_8 = arith.constant dense<0.000000e+00> : vector<2x16xf32>
    %11 = tpu.matmul %9, %10, %cst_8 {dimension_numbers = #tpu.dot_dimension_numbers<[1], [1], [0], [0], [0, 0, 1, 0], [], []>} : vector<2x128xbf16>, vector<16x128xbf16>, vector<2x16xf32> -> vector<2x16xf32>
    %c0_9 = arith.constant 0 : index
    %c0_10 = arith.constant 0 : index
    %12 = vector.load %arg5[%c0_9, %c0_10] : memref<2x1xf32, #tpu.memory_space<vmem>>, vector<2x1xf32>
    %13 = vector.broadcast %12 : vector<2x1xf32> to vector<2x16xf32>
    %14 = arith.addf %11, %13 : vector<2x16xf32>
    %cst_11 = arith.constant 0.000000e+00 : f32
    %15 = vector.broadcast %cst_11 : f32 to vector<2x16xf32>
    %16 = arith.subf %15, %14 : vector<2x16xf32>
    %17 = math.exp %16 : vector<2x16xf32>
    %cst_12 = arith.constant 1.000000e+00 : f32
    %18 = vector.broadcast %cst_12 : f32 to vector<2x16xf32>
    %19 = arith.addf %18, %17 : vector<2x16xf32>
    %cst_13 = arith.constant 1.000000e+00 : f32
    %20 = vector.broadcast %cst_13 : f32 to vector<2x16xf32>
    %21 = arith.divf %20, %19 : vector<2x16xf32>
    %c0_14 = arith.constant 0 : index
    %c0_15 = arith.constant 0 : index
    %22 = vector.load %arg6[%c0_14, %c0_15] : memref<2x16xf32, #tpu.memory_space<vmem>>, vector<2x16xf32>
    tpu.vector_store %arg6[%c0_14, %c0_15], %21 {strides = array<i32>} : memref<2x16xf32, #tpu.memory_space<vmem>>, vector<2x16xf32>,
    return
  }
  func.func @transform_0(%arg0: i32) -> (i32, i32) {
    %c0_i32 = arith.constant 0 : i32
    %c0_i32_0 = arith.constant 0 : i32
    return %arg0, %c0_i32 : i32, i32
  }
  func.func @transform_1(%arg0: i32) -> (i32, i32) {
    %c0_i32 = arith.constant 0 : i32
    %c0_i32_0 = arith.constant 0 : i32
    %c0_i32_1 = arith.constant 0 : i32
    return %c0_i32, %c0_i32_0 : i32, i32
  }
  func.func @transform_2(%arg0: i32) -> (i32, i32) {
    %c0_i32 = arith.constant 0 : i32
    %c0_i32_0 = arith.constant 0 : i32
    %c0_i32_1 = arith.constant 0 : i32
    return %c0_i32, %c0_i32_0 : i32, i32
  }
  func.func @transform_3(%arg0: i32) -> (i32, i32) {
    %c0_i32 = arith.constant 0 : i32
    %c0_i32_0 = arith.constant 0 : i32
    %c0_i32_1 = arith.constant 0 : i32
    return %c0_i32, %c0_i32_0 : i32, i32
  }
  func.func @transform_4(%arg0: i32) -> (i32, i32) {
    %c0_i32 = arith.constant 0 : i32
    %c0_i32_0 = arith.constant 0 : i32
    %c0_i32_1 = arith.constant 0 : i32
    return %c0_i32, %c0_i32_0 : i32, i32
  }
  func.func @transform_5(%arg0: i32) -> (i32, i32) {
    %c0_i32 = arith.constant 0 : i32
    %c0_i32_0 = arith.constant 0 : i32
    return %c0_i32, %arg0 : i32, i32
  }
}

</mosaic_0001>

<bundles_post_ra>
// kernel: tpu_custom_call.1
= control target key start
LH: loop header
LB: loop body
LE: loop exit
PB: predicated region body
PF: predicated region fallthrough
CT: control target
= control target key end

     0   :  { %10 = vsyncpa [#allocation3], 0  ;;  %s737_s0 = inlined_call_operand.hbm [shape: f32[16,512], index: 0, kind: input, shape index: {}]   ;;  %s738_s1 = inlined_call_operand.hbm [shape: bf16[512,128], index: 1, kind: input, shape index: {}]   ;;  %s739_s2 = inlined_call_operand.vmem [shape: f32[1,128], index: 2, kind: input, shape index: {}]   ;;  %s740_s3 = inlined_call_operand.vmem [shape: bf16[2,128], index: 3, kind: input, shape index: {}]   ;;  %s741_s4 = inlined_call_operand.vmem [shape: f32[2,1], index: 4, kind: input, shape index: {}]   ;;  %s742_s5 = inlined_call_operand.hbm [shape: f32[2,16], index: 5, kind: output, shape index: {}]  }
   0x1   :  { %11 = vsyncpa [#allocation6], 0 }
   0x2   :  { %12 = vsyncpa [#allocation4], 0  ;;  %s679_s18 = smov [#allocation2]  }
   0x3   :  { %s18_s19 = sshll.u32 %s679_s18, 4  ;;  %s19_s19 = int_to_ptr.vmem [resolvable:$true] %s18_s19 }
   0x4   :  { %s621_s20 = scalar_lea.vmem %s19_s19, 1024  ;;  %p626_p1 = scmp.lt.s32.totalorder %s19_s19, %s19_s19 }
   0x5   :  { %p622_p0 = scmp.ne.s32.totalorder %s19_s19, %s621_s20  ;;  %p627_p2 = scmp.lt.s32.totalorder %s621_s20, %s621_s20 }
   0x7   :  { %p628_p3 = por %p627_p2, %p626_p1 }
   0x9   :  { %p629_p4 = pnand %p628_p3, %p622_p0 }
   0xb   :  { %632 = shalt.err (!%p629_p4)
}
   0xc   :  { %s680_s21 = smov 512   ;;  %s681_s22 = smov 32  }
   0xd   :  { %24 = dma.hbm_to_vmem [thread:$0]  %s737_s0, 1024, %s19_s19, [#allocation3], %s680_s21, %s680_s21, %s681_s22  }
   0xe   :  { %s682_s25 = smov [#allocation5]  }
   0xf   :  { %s30_s26 = sshll.u32 %s682_s25, 4  ;;  %s31_s26 = int_to_ptr.vmem [resolvable:$true] %s30_s26 }
  0x10   :  { %s641_s27 = scalar_lea.vmem %s31_s26, 4096  ;;  %p646_p6 = scmp.lt.s32.totalorder %s31_s26, %s31_s26 }
  0x11   :  { %p642_p5 = scmp.ne.s32.totalorder %s31_s26, %s641_s27  ;;  %p647_p7 = scmp.lt.s32.totalorder %s641_s27, %s641_s27 }
  0x13   :  { %p648_p8 = por %p647_p7, %p646_p6 }
  0x15   :  { %p649_p9 = pnand %p648_p8, %p642_p5 }
  0x17   :  { %652 = shalt.err (!%p649_p9)
}
  0x18   :  { %s683_s28 = smov 64   ;;  %s684_s29 = smov 4  }
  0x19   :  { %36 = dma.hbm_to_vmem [thread:$0]  %s738_s1, 4096, %s31_s26, [#allocation6], %s683_s28, %s683_s28, %s684_s29  }
  0x1a   :  { %673 = dma.done.wait [#allocation3], 1024  }
  0x1b   :  { %674 = vsyncadd [#allocation3], 4294966272 }
  0x1c   :  { %675 = dma.done.wait [#allocation6], 4096  }
  0x1d   :  { %676 = vsyncadd [#allocation6], 4294963200  ;;  %v577_v0 = vld [vmem:[#allocation5 + $0x78] sm:$0xff]   ;;  %v581_v4 = vld [vmem:[#allocation5 + $0x70] sm:$0xff]   ;;  %v685_v44 = vmov 0.0   ;;  %vm686_vm0 = vmmov 0  }
  0x1e   :  { %v578_v1 = vld [vmem:[#allocation5 + $0xf8] sm:$0xff]   ;;  %514 = vmatprep.subr.bf16.mxu0 %v577_v0  ;;  %v582_v5 = vld [vmem:[#allocation5 + $0xf0] sm:$0xff]   ;;  %v585_v8 = vld [vmem:[#allocation5 + $0x68] sm:$0xff]   ;;  %v687_v46 = vmov 0   ;;  %s688_s9 = smov [#allocation7]   ;;  %vm463_vm1 = vcmask 123904  }
  0x1f   :  { %v579_v2 = vld [vmem:[#allocation5 + $0x38] sm:$0xff]   ;;  %536 = vmatprep.subr.bf16.mxu1 %v578_v1  ;;  %v583_v6 = vld [vmem:[#allocation5 + $0x30] sm:$0xff]   ;;  %v586_v9 = vld [vmem:[#allocation5 + $0xe8] sm:$0xff]   ;;  %576 = vset.pattern.permute.xlu0 %v687_v46  ;;  %s471_s10 = sshll.u32 %s688_s9, 4  ;;  %s472_s10 = int_to_ptr.vmem [resolvable:$true] %s471_s10 }
  0x20   :  { %v580_v3 = vld [vmem:[#allocation5 + $0xb8] sm:$0xff]   ;;  %515 = vmatpush3.bf16.msra.mxu0 %v579_v2  ;;  %v584_v7 = vld [vmem:[#allocation5 + $0xb0] sm:$0xff]   ;;  %v587_v10 = vld [vmem:[#allocation5 + $0x28] sm:$0xff]   ;;  %p658_p11 = scmp.lt.s32.totalorder %s472_s10, %s472_s10 }
  0x21   :  { %537 = vmatpush3.bf16.msra.mxu1 %v580_v3  ;;  %516 = vmatprep.subr.bf16.mxu0 %v581_v4  ;;  %v588_v11 = vld [vmem:[#allocation5 + $0xa8] sm:$0xff]   ;;  %v589_v12 = vld [vmem:[#allocation5 + $0x60] sm:$0xff]   ;;  %v593_v16 = vld [vmem:[#allocation5 + $0x58] sm:$0xff]  }
  0x22   :  { %538 = vmatprep.subr.bf16.mxu1 %v582_v5  ;;  %v590_v13 = vld [vmem:[#allocation5 + $0xe0] sm:$0xff]   ;;  %v594_v17 = vld [vmem:[#allocation5 + $0xd8] sm:$0xff]   ;;  %v597_v20 = vld [vmem:[#allocation5 + $0x50] sm:$0xff]  }
  0x23   :  { %v591_v14 = vld [vmem:[#allocation5 + $0x20] sm:$0xff]   ;;  %v595_v18 = vld [vmem:[#allocation5 + $0x18] sm:$0xff]   ;;  %v598_v21 = vld [vmem:[#allocation5 + $0xd0] sm:$0xff]  }
  0x24   :  { %517 = vmatpush3.bf16.msra.mxu0 %v583_v6  ;;  %v592_v15 = vld [vmem:[#allocation5 + $0xa0] sm:$0xff]   ;;  %v596_v19 = vld [vmem:[#allocation5 + $0x98] sm:$0xff]   ;;  %v599_v22 = vld [vmem:[#allocation5 + $0x10] sm:$0xff]  }
  0x25   :  { %539 = vmatpush3.bf16.msra.mxu1 %v584_v7  ;;  %518 = vmatprep.subr.bf16.mxu0 %v585_v8  ;;  %v600_v23 = vld [vmem:[#allocation5 + $0x90] sm:$0xff]   ;;  %v601_v24 = vld [vmem:[#allocation5 + $0x48] sm:$0xff]   ;;  %v605_v28 = vld [vmem:[#allocation5 + $0x40] sm:$0xff]  }
  0x26   :  { %540 = vmatprep.subr.bf16.mxu1 %v586_v9  ;;  %v602_v25 = vld [vmem:[#allocation5 + $0xc8] sm:$0xff]   ;;  %v606_v29 = vld [vmem:[#allocation5 + $0xc0] sm:$0xff]   ;;  %v53_v34 = vld [vmem:[#allocation2 + $0x18] sm:$0xff] }
  0x27   :  { %v603_v26 = vld [vmem:[#allocation5 + $0x8] sm:$0xff]   ;;  %v607_v30 = vld [vmem:[#allocation5] sm:$0xff]   ;;  %v57_v36 = vld [vmem:[#allocation2 + $0x38] sm:$0xff] }
  0x28   :  { %519 = vmatpush3.bf16.msra.mxu0 %v587_v10  ;;  %v604_v27 = vld [vmem:[#allocation5 + $0x88] sm:$0xff]   ;;  %v608_v31 = vld [vmem:[#allocation5 + $0x80] sm:$0xff]   ;;  %v61_v39 = vpack.c.bf16 %v57_v36, %v53_v34  ;;  %v52_v41 = vld [vmem:[#allocation2 + $0x10] sm:$0xff] }
  0x29   :  { %541 = vmatpush3.bf16.msra.mxu1 %v588_v11  ;;  %520 = vmatprep.subr.bf16.mxu0 %v589_v12  ;;  %v51_v32 = vld [vmem:[#allocation2 + $0x8] sm:$0xff]  ;;  %v50_v37 = vld [vmem:[#allocation2] sm:$0xff]  ;;  %v56_v42 = vld [vmem:[#allocation2 + $0x30] sm:$0xff] }
  0x2a   :  { %542 = vmatprep.subr.bf16.mxu1 %v590_v13  ;;  %v55_v33 = vld [vmem:[#allocation2 + $0x28] sm:$0xff]  ;;  %v54_v38 = vld [vmem:[#allocation2 + $0x20] sm:$0xff]  ;;  %v60_v43 = vpack.c.bf16 %v56_v42, %v52_v41  ;;  %398 = vmatprep.mubr.bf16.mxu1 %v61_v39 }
  0x2b   :  { %v59_v35 = vpack.c.bf16 %v55_v33, %v51_v32  ;;  %v58_v40 = vpack.c.bf16 %v54_v38, %v50_v37  ;;  %v411_v45 = vld [vmem:[%s741_s4] sm:$0x3] }
  0x2c   :  { %521 = vmatpush3.bf16.msra.mxu0 %v591_v14  ;;  %414 = vperm.xlu0 %576, %v411_v45   ;;  %v481_v49 = vld [vmem:[%s739_s2] ss:$0 sm:$0xff] }
  0x2d   :  { %543 = vmatpush3.bf16.msra.mxu1 %v592_v15  ;;  %522 = vmatprep.subr.bf16.mxu0 %v593_v16  ;;  %v409_v3 = vld [vmem:[%s740_s3] sm:$0x1]  ;;  %s653_s3 = scalar_lea.vmem %s472_s10, 32 }
  0x2e   :  { %544 = vmatprep.subr.bf16.mxu1 %v594_v17  ;;  %357 = vmatprep.mubr.bf16.mxu0 %v59_v35  ;;  %p654_p10 = scmp.ne.s32.totalorder %s472_s10, %s653_s3  ;;  %p659_p12 = scmp.lt.s32.totalorder %s653_s3, %s653_s3 }
  0x30   :  { %523 = vmatpush3.bf16.msra.mxu0 %v595_v18  ;;  %p660_p13 = por %p659_p12, %p658_p11 }
  0x31   :  { %545 = vmatpush3.bf16.msra.mxu1 %v596_v19  ;;  %524 = vmatprep.subr.bf16.mxu0 %v597_v20 }
  0x32   :  { %546 = vmatprep.subr.bf16.mxu1 %v598_v21  ;;  %p661_p0 = pnand %p660_p13, %p654_p10 }
  0x34   :  { %525 = vmatpush3.bf16.msra.mxu0 %v599_v22 }
  0x35   :  { %547 = vmatpush3.bf16.msra.mxu1 %v600_v23  ;;  %526 = vmatprep.subr.bf16.mxu0 %v601_v24 }
  0x36   :  { %548 = vmatprep.subr.bf16.mxu1 %v602_v25 }
  0x38   :  { %527 = vmatpush3.bf16.msra.mxu0 %v603_v26 }
  0x39   :  { %549 = vmatpush3.bf16.msra.mxu1 %v604_v27  ;;  %528 = vmatprep.subr.bf16.mxu0 %v605_v28 }
  0x3a   :  { %550 = vmatprep.subr.bf16.mxu1 %v606_v29 }
  0x3c   :  { %529 = vmatpush3.bf16.msra.mxu0 %v607_v30 }
  0x3d   :  { %551 = vmatpush3.bf16.msra.mxu1 %v608_v31  ;;  %560 = vmatprep.subr.bf16.mxu0 %v685_v44 }
  0x3f   :  { %358 = vmatmul.mubr.bf16.vlgmr.msra.gmra.mxu0 %v58_v40 }
  0x40   :  { %399 = vmatmul.mubr.bf16.vlgmr.msra.gmra.mxu1 %v60_v43  ;;  %562 = vmatprep.mubr.msk.bf16.mxu0 %vm686_vm0, %v685_v44 }
  0xa7   :  { %v415_v4 = vpop.permute.xlu0 %414 }
  0xff   :  { %v530_v47 = vpop.f32.mrf.mxu0 }
 0x100   :  { %v552_v48 = vpop.f32.mrf.mxu1 }
 0x101   :  { %v531_v50 = vpop.f32.mrf.mxu0 }
 0x102   :  { %v532_v51 = vadd.f32 %v531_v50, %v530_v47  ;;  %v553_v52 = vpop.f32.mrf.mxu1 }
 0x103   :  { %v533_v53 = vpop.f32.mrf.mxu0  ;;  %v554_v57 = vadd.f32 %v553_v52, %v552_v48 }
 0x104   :  { %v360_v54 = vadd.f32 %v532_v51, %v481_v49  ;;  %v555_v55 = vpop.f32.mrf.mxu1 }
 0x105   :  { %v534_v56 = vpop.f32.mrf.mxu0 }
 0x106   :  { %v535_v58 = vadd.f32 %v534_v56, %v533_v53  ;;  %v556_v59 = vpop.f32.mrf.mxu1  ;;  %v401_v60 = vadd.f32 %v554_v57, %v360_v54 }
 0x107   :  { %v557_v62 = vadd.f32 %v556_v59, %v555_v55 }
 0x108   :  { %v363_v61 = vadd.f32 %v535_v58, %v481_v49  ;;  %v407_v0 = vmax.f32 %v401_v60, 0.0 }
 0x10a   :  { %v404_v63 = vadd.f32 %v557_v62, %v363_v61 }
 0x10c   :  { %v408_v1 = vmax.f32 %v404_v63, 0.0 }
 0x10e   :  { %v410_v2 = vpack.c.bf16 %v408_v1, %v407_v0 }
 0x110   :  { %561 = vmatpush3.bf16.xpose.msra.mxu0 %v410_v2 }
 0x117   :  { %563 = vmatmul.mubr.bf16.vlgmr.msra.gmra.mxu0 %v409_v3 }
 0x1d7   :  { %v451_v5 = vpop.f32.mrf.mxu0 }
 0x1d8   :  { %v452_v6 = vadd.f32 %v451_v5, %v415_v4 }
 0x1d9   :  { %v564_v7 = vpop.f32.mrf.mxu0 }
 0x1da   :  { %v457_v8 = vsub.f32 0.0, %v452_v6 }
 0x1db   :  { %v454_v9 = vpop.f32.mrf.mxu0 }
 0x1dc   :  { %v458_v10 = vmul.f32 1.442695, %v457_v8 }
 0x1dd   :  { %v565_v11 = vpop.f32.mrf.mxu0 }
 0x1de   :  { %609 = vpow2.f32 %v458_v10 }
 0x1eb   :  { %v610_v12 = vpop.eup %609 }
 0x1ec   :  { %v460_v13 = vadd.f32 1.0, %v610_v12 }
 0x1ee   :  { %611 = vrcp.f32 %v460_v13 }
 0x1fb   :  { %v612_v14 = vpop.eup %611 }
 0x1fc   :  { %464 = vst.msk [vmem:[#allocation7] sm:$0x3] %vm463_vm1, %v612_v14 }
 0x1fd   :  { %664 = shalt.err (!%p661_p0)
}
 0x1fe   :  { %474 = dma.vmem_to_hbm [thread:$0]  %s472_s10, 32, %s742_s5, [#allocation4]  }
 0x1ff   :  { %677 = dma.done.wait [#allocation4], 32  }
 0x200   :  { %678 = vsyncadd [#allocation4], 4294967264 }
 0x201   :  { %478 = vsyncpa [#allocation3], 1 }
 0x202   :  { %479 = vsyncpa [#allocation6], 1 }
 0x203   :  { %480 = vsyncpa [#allocation4], 1 }

</bundles_post_ra>
